<compile_context>
chip_gen: v5e
topology: v5e:2x2
jax: 0.10.0
libtpu: 0.0.40
codegen_flags: <defaults>
</compile_context>

<pallas_src>
import jax
import jax.numpy as jnp
from jax.experimental import pallas as pl
from jax.experimental.pallas import tpu as pltpu


def _edm_kernel(coef_ref, x_ref, w1t_ref, b1_ref, wt_ref, w2t_ref, b2_ref,
                o_ref):
    # coef_ref : SMEM (B, 4)     per-batch [c_skip, c_out, c_in, c_noise]
    # x_ref    : VMEM (1, C, T)  spatial-on-lanes input block
    # w1t_ref  : VMEM (Hh, C)    noise-model layer-1 weight (transposed)
    # b1_ref   : VMEM (Hh, 1)
    # wt_ref   : VMEM (Hh, 1)    c_noise conditioning vector
    # w2t_ref  : VMEM (C, Hh)    noise-model layer-2 weight (transposed)
    # b2_ref   : VMEM (C, 1)
    # o_ref    : VMEM (1, C, T)  D_x output block
    b = pl.program_id(0)
    c_skip = coef_ref[b, 0]
    c_out = coef_ref[b, 1]
    c_in = coef_ref[b, 2]
    c_noise = coef_ref[b, 3]

    x = x_ref[0]                                   # (C, T), lane-dense
    x_in = c_in * x                                # batch.corr = c_in * skip_corr

    # Hoisted bias: one (Hh, 1) combine instead of two (Hh, T) broadcast-adds.
    b_eff = b1_ref[...] + c_noise * wt_ref[...]

    # noise_model(batch, c_noise): per-pixel MLP over channels.
    h = jnp.dot(w1t_ref[...], x_in, preferred_element_type=jnp.float32)  # (Hh, T)
    h = h + b_eff
    h = h * jax.nn.sigmoid(h)                      # SiLU (exp/sigmoid on EUP)
    f_x = jnp.dot(w2t_ref[...], h, preferred_element_type=jnp.float32)   # (C, T)
    f_x = f_x + b2_ref[...]

    # D_x = c_skip * skip_corr + c_out * F_x
    o_ref[0] = c_skip * x + c_out * f_x


def _pick_spatial_tile(hw, cap=2048):
    """Largest lane-aligned tile of the spatial axis (<= cap) that divides HW."""
    if hw <= cap:
        return hw                     # full-extent block is always legal
    t = (cap // 128) * 128
    while t >= 128:
        if hw % t == 0:
            return t
        t -= 128
    return hw                         # fallback: single full block


def edm_precond_forward(x_nchw, sigma, params, *, sigma_data=1.0):
    """x_nchw: (B, C, H, W) float32; sigma: (B,) float32 > 0."""
    w1, b1, wt, w2, b2 = params
    B, C, H, W = x_nchw.shape
    HW = H * W
    Hh = w1.shape[1]

    # NCHW -> (B, C, HW): free reshape, no transpose (spatial on lanes).
    x = x_nchw.reshape(B, C, HW).astype(jnp.float32)

    # Transposed weights / column biases for the (weights @ x) layout.
    w1t = jnp.transpose(w1).astype(jnp.float32)     # (Hh, C)
    w2t = jnp.transpose(w2).astype(jnp.float32)     # (C, Hh)
    b1c = b1.reshape(Hh, 1).astype(jnp.float32)
    wtc = wt.reshape(Hh, 1).astype(jnp.float32)
    b2c = b2.reshape(C, 1).astype(jnp.float32)

    # Precompute per-batch EDM coefficients in the wrapper (scalar prefetch).
    s = sigma.astype(jnp.float32)
    sd2 = jnp.float32(sigma_data) ** 2
    s2 = s * s
    c_skip = sd2 / (s2 + sd2)
    c_out = s * sigma_data / jnp.sqrt(s2 + sd2)
    c_in = 1.0 / jnp.sqrt(sd2 + s2)
    c_noise = jnp.log(s) * 0.25
    coefs = jnp.stack([c_skip, c_out, c_in, c_noise], axis=1)  # (B, 4)

    # Spatial tile: lane-aligned, sized well under the v7x 32 MiB scoped VMEM
    # (C=4 fp32 rows -> a 2048-wide tile is only 32 KiB per in/out block).
    T = _pick_spatial_tile(HW)
    grid = (B, HW // T)

    grid_spec = pltpu.PrefetchScalarGridSpec(
        num_scalar_prefetch=1,                     # coefs -> SMEM
        grid=grid,
        in_specs=[
            pl.BlockSpec((1, C, T), lambda b, j, coefs: (b, 0, j)),   # x
            pl.BlockSpec((Hh, C), lambda b, j, coefs: (0, 0)),        # w1t
            pl.BlockSpec((Hh, 1), lambda b, j, coefs: (0, 0)),        # b1
            pl.BlockSpec((Hh, 1), lambda b, j, coefs: (0, 0)),        # wt
            pl.BlockSpec((C, Hh), lambda b, j, coefs: (0, 0)),        # w2t
            pl.BlockSpec((C, 1), lambda b, j, coefs: (0, 0)),         # b2
        ],
        out_specs=pl.BlockSpec((1, C, T), lambda b, j, coefs: (b, 0, j)),
    )

    out = pl.pallas_call(
        _edm_kernel,
        out_shape=jax.ShapeDtypeStruct((B, C, HW), jnp.float32),
        grid_spec=grid_spec,
        compiler_params=pltpu.CompilerParams(
            dimension_semantics=("parallel", "parallel")),
    )(coefs, x, w1t, b1c, wtc, w2t, b2c)

    # (B, C, HW) -> NCHW is a free reshape.
    return out.reshape(B, C, H, W)


def edm_precond_reference(x_nchw, sigma, params, *, sigma_data=1.0):
    """Pure-JAX reference mirroring EDMPrecond.forward semantics."""
    w1, b1, wt, w2, b2 = params
    B, C, H, W = x_nchw.shape
    skip_corr = x_nchw.astype(jnp.float32)
    s = sigma.reshape(B, 1, 1, 1).astype(jnp.float32)
    c_skip = sigma_data ** 2 / (s ** 2 + sigma_data ** 2)
    c_out = s * sigma_data / jnp.sqrt(s ** 2 + sigma_data ** 2)
    c_in = 1.0 / jnp.sqrt(sigma_data ** 2 + s ** 2)
    c_noise = jnp.log(sigma).reshape(B) / 4.0

    x_in = c_in * skip_corr                                   # NCHW
    xh = jnp.transpose(x_in, (0, 2, 3, 1))                    # NHWC
    h = xh @ w1 + b1 + c_noise.reshape(B, 1, 1, 1) * wt
    h = h * jax.nn.sigmoid(h)
    f = h @ w2 + b2                                           # NHWC
    f_nchw = jnp.transpose(f, (0, 3, 1, 2))
    return c_skip * skip_corr + c_out * f_nchw


if __name__ == "__main__":
    B, C, H, W = 2, 4, 16, 16
    Hh = 32  # hidden width of the synthetic noise model
    sigma_data = 1.0

    key = jax.random.PRNGKey(0)
    kx, ks, k1, k2, k3, k4, k5 = jax.random.split(key, 7)

    x = jax.random.normal(kx, (B, C, H, W), dtype=jnp.float32)
    sigma = jnp.exp(jax.random.normal(ks, (B,), dtype=jnp.float32))  # > 0

    # Deterministic synthetic noise-model parameters.
    w1 = jax.random.normal(k1, (C, Hh), dtype=jnp.float32) * 0.2
    b1 = jax.random.normal(k2, (1, Hh), dtype=jnp.float32) * 0.1
    wt = jax.random.normal(k3, (1, Hh), dtype=jnp.float32) * 0.1
    w2 = jax.random.normal(k4, (Hh, C), dtype=jnp.float32) * 0.2
    b2 = jax.random.normal(k5, (1, C), dtype=jnp.float32) * 0.1
    params = (w1, b1, wt, w2, b2)

    out = edm_precond_forward(x, sigma, params, sigma_data=sigma_data)
    out = jax.block_until_ready(out)

    ref = edm_precond_reference(x, sigma, params, sigma_data=sigma_data)
    assert out.shape == (B, C, H, W)
    assert jnp.allclose(out, ref, atol=1e-5, rtol=1e-5), "mismatch vs reference"

    print("KERNEL_OK")
</pallas_src>

<mosaic_0001>
module attributes {stable_mosaic.version = 11 : i64} {
  func.func @_edm_kernel(%arg0: i32, %arg1: i32, %arg2: memref<2x4xf32, #tpu.memory_space<smem>>, %arg3: memref<1x4x256xf32, #tpu.memory_space<vmem>>, %arg4: memref<32x4xf32, #tpu.memory_space<vmem>>, %arg5: memref<32x1xf32, #tpu.memory_space<vmem>>, %arg6: memref<32x1xf32, #tpu.memory_space<vmem>>, %arg7: memref<4x32xf32, #tpu.memory_space<vmem>>, %arg8: memref<4x1xf32, #tpu.memory_space<vmem>>, %arg9: memref<1x4x256xf32, #tpu.memory_space<vmem>>) attributes {dimension_semantics = [#tpu.dimension_semantics<parallel>, #tpu.dimension_semantics<parallel>], iteration_bounds = array<i64: 2, 1>, scalar_prefetch = 1 : i64, scratch_operands = 0 : i64, tpu.core_type = #tpu.core_type<tc>, window_params = [{transform_indices = @transform_0, window_bounds = array<i64: 1, 4, 256>}, {pipeline_mode = #tpu.pipeline_mode<synchronous>, transform_indices = @transform_1, window_bounds = array<i64: 32, 4>}, {pipeline_mode = #tpu.pipeline_mode<synchronous>, transform_indices = @transform_2, window_bounds = array<i64: 32, 1>}, {pipeline_mode = #tpu.pipeline_mode<synchronous>, transform_indices = @transform_3, window_bounds = array<i64: 32, 1>}, {pipeline_mode = #tpu.pipeline_mode<synchronous>, transform_indices = @transform_4, window_bounds = array<i64: 4, 32>}, {pipeline_mode = #tpu.pipeline_mode<synchronous>, transform_indices = @transform_5, window_bounds = array<i64: 4, 1>}, {transform_indices = @transform_6, window_bounds = array<i64: 1, 4, 256>}]} {
    %0 = arith.index_cast %arg0 : i32 to index
    %c0 = arith.constant 0 : index
    %1 = memref.load %arg2[%0, %c0] : memref<2x4xf32, #tpu.memory_space<smem>>
    %2 = arith.index_cast %arg0 : i32 to index
    %c1 = arith.constant 1 : index
    %3 = memref.load %arg2[%2, %c1] : memref<2x4xf32, #tpu.memory_space<smem>>
    %4 = arith.index_cast %arg0 : i32 to index
    %c2 = arith.constant 2 : index
    %5 = memref.load %arg2[%4, %c2] : memref<2x4xf32, #tpu.memory_space<smem>>
    %6 = arith.index_cast %arg0 : i32 to index
    %c3 = arith.constant 3 : index
    %7 = memref.load %arg2[%6, %c3] : memref<2x4xf32, #tpu.memory_space<smem>>
    %c0_0 = arith.constant 0 : index
    %c0_1 = arith.constant 0 : index
    %c0_2 = arith.constant 0 : index
    %8 = vector.load %arg3[%c0_0, %c0_1, %c0_2] : memref<1x4x256xf32, #tpu.memory_space<vmem>>, vector<1x4x256xf32>
    %9 = vector.shape_cast %8 : vector<1x4x256xf32> to vector<4x256xf32>
    %10 = vector.broadcast %5 : f32 to vector<4x256xf32>
    %11 = arith.mulf %10, %9 : vector<4x256xf32>
    %c0_3 = arith.constant 0 : index
    %c0_4 = arith.constant 0 : index
    %12 = vector.load %arg5[%c0_3, %c0_4] : memref<32x1xf32, #tpu.memory_space<vmem>>, vector<32x1xf32>
    %c0_5 = arith.constant 0 : index
    %c0_6 = arith.constant 0 : index
    %13 = vector.load %arg6[%c0_5, %c0_6] : memref<32x1xf32, #tpu.memory_space<vmem>>, vector<32x1xf32>
    %14 = vector.broadcast %7 : f32 to vector<32x1xf32>
    %15 = arith.mulf %14, %13 : vector<32x1xf32>
    %16 = arith.addf %12, %15 : vector<32x1xf32>
    %c0_7 = arith.constant 0 : index
    %c0_8 = arith.constant 0 : index
    %17 = vector.load %arg4[%c0_7, %c0_8] : memref<32x4xf32, #tpu.memory_space<vmem>>, vector<32x4xf32>
    %cst = arith.constant dense<0.000000e+00> : vector<32x256xf32>
    %18 = tpu.matmul %17, %11, %cst {dimension_numbers = #tpu.dot_dimension_numbers<[1], [0], [0], [1], [0, 0, 1, 1], [], []>} : vector<32x4xf32>, vector<4x256xf32>, vector<32x256xf32> -> vector<32x256xf32>
    %19 = vector.broadcast %16 : vector<32x1xf32> to vector<32x256xf32>
    %20 = arith.addf %18, %19 : vector<32x256xf32>
    %21 = arith.negf %20 : vector<32x256xf32>
    %22 = math.exp %21 : vector<32x256xf32>
    %cst_9 = arith.constant 1.000000e+00 : f32
    %23 = vector.broadcast %cst_9 : f32 to vector<32x256xf32>
    %24 = arith.addf %23, %22 : vector<32x256xf32>
    %25 = arith.divf %23, %24 : vector<32x256xf32>
    %26 = arith.mulf %20, %25 : vector<32x256xf32>
    %c0_10 = arith.constant 0 : index
    %c0_11 = arith.constant 0 : index
    %27 = vector.load %arg7[%c0_10, %c0_11] : memref<4x32xf32, #tpu.memory_space<vmem>>, vector<4x32xf32>
    %cst_12 = arith.constant dense<0.000000e+00> : vector<4x256xf32>
    %28 = tpu.matmul %27, %26, %cst_12 {dimension_numbers = #tpu.dot_dimension_numbers<[1], [0], [0], [1], [0, 0, 1, 1], [], []>} : vector<4x32xf32>, vector<32x256xf32>, vector<4x256xf32> -> vector<4x256xf32>
    %c0_13 = arith.constant 0 : index
    %c0_14 = arith.constant 0 : index
    %29 = vector.load %arg8[%c0_13, %c0_14] : memref<4x1xf32, #tpu.memory_space<vmem>>, vector<4x1xf32>
    %30 = vector.broadcast %29 : vector<4x1xf32> to vector<4x256xf32>
    %31 = arith.addf %28, %30 : vector<4x256xf32>
    %32 = vector.broadcast %1 : f32 to vector<4x256xf32>
    %33 = arith.mulf %32, %9 : vector<4x256xf32>
    %34 = vector.broadcast %3 : f32 to vector<4x256xf32>
    %35 = arith.mulf %34, %31 : vector<4x256xf32>
    %36 = arith.addf %33, %35 : vector<4x256xf32>
    %c0_15 = arith.constant 0 : index
    %c0_16 = arith.constant 0 : index
    %c0_17 = arith.constant 0 : index
    %37 = vector.load %arg9[%c0_15, %c0_16, %c0_17] : memref<1x4x256xf32, #tpu.memory_space<vmem>>, vector<1x4x256xf32>
    %38 = vector.shape_cast %37 : vector<1x4x256xf32> to vector<4x256xf32>
    %39 = vector.shape_cast %36 : vector<4x256xf32> to vector<1x4x256xf32>
    tpu.vector_store %arg9[%c0_15, %c0_16, %c0_17], %39 {strides = array<i32>} : memref<1x4x256xf32, #tpu.memory_space<vmem>>, vector<1x4x256xf32>,
    return
  }
  func.func @transform_0(%arg0: i32, %arg1: i32, %arg2: memref<2x4xf32, #tpu.memory_space<smem>>) -> (i32, i32, i32) {
    %c0_i32 = arith.constant 0 : i32
    %c0_i32_0 = arith.constant 0 : i32
    return %arg0, %c0_i32, %arg1 : i32, i32, i32
  }
  func.func @transform_1(%arg0: i32, %arg1: i32, %arg2: memref<2x4xf32, #tpu.memory_space<smem>>) -> (i32, i32) {
    %c0_i32 = arith.constant 0 : i32
    %c0_i32_0 = arith.constant 0 : i32
    %c0_i32_1 = arith.constant 0 : i32
    return %c0_i32, %c0_i32_0 : i32, i32
  }
  func.func @transform_2(%arg0: i32, %arg1: i32, %arg2: memref<2x4xf32, #tpu.memory_space<smem>>) -> (i32, i32) {
    %c0_i32 = arith.constant 0 : i32
    %c0_i32_0 = arith.constant 0 : i32
    %c0_i32_1 = arith.constant 0 : i32
    return %c0_i32, %c0_i32_0 : i32, i32
  }
  func.func @transform_3(%arg0: i32, %arg1: i32, %arg2: memref<2x4xf32, #tpu.memory_space<smem>>) -> (i32, i32) {
    %c0_i32 = arith.constant 0 : i32
    %c0_i32_0 = arith.constant 0 : i32
    %c0_i32_1 = arith.constant 0 : i32
    return %c0_i32, %c0_i32_0 : i32, i32
  }
  func.func @transform_4(%arg0: i32, %arg1: i32, %arg2: memref<2x4xf32, #tpu.memory_space<smem>>) -> (i32, i32) {
    %c0_i32 = arith.constant 0 : i32
    %c0_i32_0 = arith.constant 0 : i32
    %c0_i32_1 = arith.constant 0 : i32
    return %c0_i32, %c0_i32_0 : i32, i32
  }
  func.func @transform_5(%arg0: i32, %arg1: i32, %arg2: memref<2x4xf32, #tpu.memory_space<smem>>) -> (i32, i32) {
    %c0_i32 = arith.constant 0 : i32
    %c0_i32_0 = arith.constant 0 : i32
    %c0_i32_1 = arith.constant 0 : i32
    return %c0_i32, %c0_i32_0 : i32, i32
  }
  func.func @transform_6(%arg0: i32, %arg1: i32, %arg2: memref<2x4xf32, #tpu.memory_space<smem>>) -> (i32, i32, i32) {
    %c0_i32 = arith.constant 0 : i32
    %c0_i32_0 = arith.constant 0 : i32
    return %arg0, %c0_i32, %arg1 : i32, i32, i32
  }
}

</mosaic_0001>

<bundles_post_ra>
// kernel: tpu_custom_call.1
= control target key start
LH: loop header
LB: loop body
LE: loop exit
PB: predicated region body
PF: predicated region fallthrough
CT: control target
= control target key end

     0   :  { %s964_s27 = smov [#allocation3]   ;;  %s1350_s0 = inlined_call_operand.vmem [shape: f32[2,4], index: 0, kind: input, shape index: {}]   ;;  %s1351_s1 = inlined_call_operand.vmem [shape: f32[2,4,256], index: 1, kind: input, shape index: {}]   ;;  %s1352_s2 = inlined_call_operand.vmem [shape: f32[32,4], index: 2, kind: input, shape index: {}]   ;;  %s1353_s3 = inlined_call_operand.vmem [shape: f32[32,1], index: 3, kind: input, shape index: {}]   ;;  %s1354_s4 = inlined_call_operand.vmem [shape: f32[32,1], index: 4, kind: input, shape index: {}]   ;;  %s1355_s5 = inlined_call_operand.vmem [shape: f32[4,32], index: 5, kind: input, shape index: {}]   ;;  %s1356_s6 = inlined_call_operand.vmem [shape: f32[4,1], index: 6, kind: input, shape index: {}]   ;;  %s1357_s7 = inlined_call_operand.hbm [shape: f32[2,4,256], index: 7, kind: output, shape index: {}]  }
   0x1   :  { %s13_s26 = sshll.u32 %s1350_s0, 4  ;;  %s14_s26 = int_to_ptr.vmem [resolvable:$true] %s13_s26 }
   0x2   :  { %16 = dma.vmem_to_smem %s14_s26, 32, %s964_s27, [#allocation2] }
   0x3   :  { %934 = dma.done.wait [#allocation2], 32 }
   0x4   :  { %935 = vsyncadd [#allocation2], 4294967264 }
   0x5   :  { %19 = sfence }
   0x6   :  { %20 = vsyncpa [#allocation5], 0 }
   0x7   :  { %22 = vsyncpa [#allocation5 + $0x1], 0  ;;  %s1009_s28 = smov 0   ;;  %s1011_s29 = smov 0  }
   0x8   :  { %s1013_s30 = smov 0   ;;  %s1015_s8 = smov 0  }
   0x9   :  { %s1017_s9 = smov 0   ;;  %s1019_s10 = smov 0  }
   0xa LB: > { %s740_s0 = sadd.s32 4294967295, %s962_s10   ;;  %s741_s11 = sadd.s32 4294967294, %s962_s10   ;;  %s962_s10 = sphi %s1019_s10, %s28_s10   ;;  %s958_s9 = sphi %s1017_s9, %s1382_s9   ;;  %s954_s8 = sphi %s1015_s8, %s1381_s8   ;;  %s950_s30 = sphi %s1013_s30, %s1380_s30   ;;  %s946_s29 = sphi %s1011_s29, %s1379_s29   ;;  %s942_s28 = sphi %s1009_s28, %s1378_s28  }
   0xb   : > { %s40_s12 = sadd.s32 1, %s958_s9  ;;  %s182_s13 = sadd.s32 1, %s950_s30 }
   0xc   : > { %p42_p0 = scmp.ge.s32.totalorder %s40_s12, 2  ;;  %p192_p1 = scmp.ne.s32.totalorder %s950_s30, %s946_s29 }
   0xd   : > { %p193_p2 = scmp.eq.s32.totalorder %s740_s0, 1  ;;  %p198_p3 = scmp.ne.s32.totalorder %s946_s29, %s942_s28 }
   0xe   : > { %s1384_s12 = smov (%p42_p0, %s40_s12), 0  ;;  %p199_p5 = scmp.eq.s32.totalorder %s741_s11, 1 }
   0xf   : > { %p1049_p4 = por %p193_p2, %p192_p1  ;;  %s177_s15 = ssub.s32 %s958_s9, %s1384_s12 }
  0x10   : > { %p744_p6 = scmp.ge.s32.totalorder %s962_s10, 1  ;;  %p180_p7 = scmp.eq.s32.totalorder %s177_s15, 0 }
  0x11   : > { %p1056_p8 = por %p199_p5, %p198_p3  ;;  %p245_p9 = scmp.lt.s32.totalorder %s962_s10, 3 }
  0x12   : > { %s1062_s17 = scalar_select %p180_p7, %s950_s30, %s182_s13  }
  0x13   : > { %p246_p10 = pnand %p744_p6, %p245_p9 }
  0x14   : > { %p280_p11 = scmp.lt.s32.totalorder (!%p246_p10), %s954_s8, 1  ;;  %s1066_s18 = sshll.u32 (!%p246_p10), %s954_s8, 7 }
  0x15   : > { %249 = sbr.rel (%p246_p10) target bundleno = 369 (0x171), region = 44  ;;  %s294_s19 = sadd.s32 (!%p246_p10), 2, %s1066_s18 }
  0x16   : > { %s296_s20 = sadd.s32 (!%p246_p10), 3, %s1066_s18  ;;  %s295_s22 = sld [smem:[#allocation3 + %s294_s19]] (!%p246_p10) }
  0x17   : > { %s297_s24 = sld [smem:[#allocation3 + %s296_s20]] (!%p246_p10)  ;;  %s292_s13 = sadd.s32 (!%p246_p10), 1, %s1066_s18 }
  0x18   : > { %s293_s15 = sld [smem:[#allocation3 + %s292_s13]] (!%p246_p10) }
  0x19   : > { %s291_s19 = sld [smem:[#allocation3 + %s1066_s18]] (!%p246_p10) }
  0x1a   : > { %s281_s21 = scalar_select %p280_p11, %s954_s8, 1  ;;  %v965_v0 = vmov 0   ;;  %v306_v2 = vld [vmem:[%s1354_s4 + $0x8] sm:$0xff]  ;;  %v308_v3 = vld [vmem:[%s1354_s4 + $0x18] sm:$0xff]  ;;  %v305_v13 = vld [vmem:[%s1354_s4] sm:$0xff]  ;;  %vm1358_vm0 = vcmask 1043456  }
  0x1b   : > { %836 = vset.pattern.permute.xlu1 %v965_v0  ;;  %835 = vset.pattern.permute.xlu0 %v965_v0  ;;  %v302_v6 = vld [vmem:[%s1353_s3 + $0x8] sm:$0xff]  ;;  %v304_v8 = vld [vmem:[%s1353_s3 + $0x18] sm:$0xff]  ;;  %v307_v14 = vld [vmem:[%s1354_s4 + $0x10] sm:$0xff]  ;;  %vm346_vm1 = vcmask 31744  }
  0x1c   : > { %837 = vset.pattern.permute.xlu2 %v965_v0  ;;  %s774_s23 = sshll.u32 %s281_s21, 3  ;;  %v299_v4 = vstv %s295_s22  ;;  %v301_v17 = vld [vmem:[%s1353_s3] sm:$0xff]  ;;  %v303_v18 = vld [vmem:[%s1353_s3 + $0x10] sm:$0xff]  ;;  %v321_v20 = vld [vmem:[%s1352_s2 + $0x18] sm:$0xff]  ;;  %s276_s21 = sand.u32 1, %s946_s29  }
  0x1d   : > { %s287_s27 = scalar_lea.vmem %s1351_s1, %s774_s23  ;;  %v309_v7 = vstv %s297_s24  ;;  %v318_v19 = vld [vmem:[%s1352_s2] sm:$0xff]  ;;  %v319_v25 = vld [vmem:[%s1352_s2 + $0x8] sm:$0xff]  ;;  %v320_v26 = vld [vmem:[%s1352_s2 + $0x10] sm:$0xff]  ;;  %s745_s20 = sshll.u32 %s276_s21, 3 }
  0x1e   : > { %v1074_v1 = vld [vmem:[%s287_s27] sm:$0xff]  ;;  %v311_v9 = vmul.f32 %v309_v7, %v306_v2  ;;  %v313_v10 = vmul.f32 %v309_v7, %v308_v3  ;;  %v310_v15 = vmul.f32 %v309_v7, %v305_v13  ;;  %v312_v16 = vmul.f32 %v309_v7, %v307_v14  ;;  %s775_s23 = sshll.u32 %s954_s8, 3  ;;  %s278_s18 = scalar_lea.vmem [#allocation4], %s745_s20 }
  0x1f   : > { %v300_v5 = vmul.f32 %v299_v4, %v1074_v1  ;;  %v583_v7 = vld [vmem:[%s1356_s6] sm:$0xf]  ;;  %s659_s22 = scalar_lea.hbm %s1357_s7, %s775_s23  ;;  %s661_s27 = sshll.u32 %s278_s18, 4  ;;  %s662_s27 = int_to_ptr.vmem [resolvable:$true] %s661_s27 }
  0x20   : > { %v315_v11 = vadd.f32 %v311_v9, %v302_v6  ;;  %v317_v12 = vadd.f32 %v313_v10, %v304_v8  ;;  %v314_v23 = vadd.f32 %v310_v15, %v301_v17  ;;  %v316_v24 = vadd.f32 %v312_v16, %v303_v18  ;;  %586 = vperm.xlu2 %837, %v583_v7   ;;  %s663_s24 = sshll.u32 %s659_s22, 4  ;;  %s646_s8 = scalar_lea.sflag [#allocation5], %s276_s21  ;;  %s664_s24 = int_to_ptr.hbm [resolvable:$true] %s663_s24 }
  0x21   : > { %343 = vst [vmem:[#allocation1] ss:$2 sm:$0xff] %v300_v5  ;;  %s896_s0 = sshra.s32 %s664_s24, 4  ;;  %s897_s0 = int_to_ptr.hbm [resolvable:$true] %s896_s0 }
  0x22   : > { %329 = vperm.xlu1 %836, %v315_v11   ;;  %339 = vperm.xlu0 %835, %v317_v12   ;;  %s898_s11 = scalar_lea.hbm %s897_s0, 8  ;;  %p903_p1 = scmp.lt.s32.totalorder %s897_s0, %s1357_s7 }
  0x23   : > { %p899_p12 = scmp.ne.s32.totalorder %s897_s0, %s898_s11 }
  0x25   : > { %p900_p13 = pnand %p899_p12, %p1049_p4 }
  0x27   : > { %p901_p0 = pneg %p900_p13 }
  0x28   : > { %v344_v21 = vld.sshfl [vmem:[#allocation1] sm:$0xff pattern:$0x75316420]  ;;  %v345_v22 = vld.sshfl [vmem:[#allocation1 + $0x8] sm:$0xff pattern:$0x75316420] }
  0x29   : > { %749 = vmatpush.msk.msra.mxu0 %vm1358_vm0, %v344_v21  ;;  %776 = vmatpush.msk.msra.mxu2 %vm1358_vm0, %v344_v21 }
  0x2a   : > { %754 = vmatpush.msk.msra.mxu1 %vm1358_vm0, %v345_v22  ;;  %777 = vmatpush.msk.msra.mxu3 %vm1358_vm0, %v345_v22 }
  0x2b   : > { %750 = vmatmul.msk.f32.vlgmr.msra.gmra.mxu0 %vm346_vm1, %v318_v19  ;;  %753 = vmatmul.msk.f32.vlgmr.msra.gmra.mxu2 %vm346_vm1, %v321_v20 }
  0x2c   : > { %755 = vmatmul.msk.f32.vlgmr.msra.gmra.mxu1 %vm346_vm1, %v318_v19  ;;  %758 = vmatmul.msk.f32.vlgmr.msra.gmra.mxu3 %vm346_vm1, %v321_v20 }
  0x2d   : > { %324 = vperm.xlu1 %836, %v314_v23   ;;  %334 = vperm.xlu0 %835, %v316_v24  }
  0x33   : > { %751 = vmatmul.msk.f32.gmra.mxu0 %vm346_vm1, %v319_v25 }
  0x34   : > { %756 = vmatmul.msk.f32.gmra.mxu1 %vm346_vm1, %v319_v25 }
  0x3b   : > { %752 = vmatmul.msk.f32.gmra.mxu0 %vm346_vm1, %v320_v26 }
  0x3c   : > { %757 = vmatmul.msk.f32.gmra.mxu1 %vm346_vm1, %v320_v26 }
  0x94   : > { %v330_v27 = vpop.permute.xlu1 %329  ;;  %v340_v35 = vpop.permute.xlu0 %339 }
  0x9f   : > { %v325_v28 = vpop.permute.xlu1 %324  ;;  %v335_v52 = vpop.permute.xlu0 %334 }
  0xa8   : > { %v381_v29 = vpop.f32.mrf.mxu0 }
  0xa9   : > { %v1125_v30 = vadd.f32 %v381_v29, %v325_v28  ;;  %v410_v31 = vpop.f32.mrf.mxu1 }
  0xaa   : > { %v1127_v32 = vadd.f32 %v410_v31, %v325_v28 }
  0xab   : > { %v759_v33 = vmul.f32 -1.442695, %v1125_v30 }
  0xac   : > { %v760_v34 = vmul.f32 -1.442695, %v1127_v32 }
  0xad   : > { %838 = vpow2.f32 %v759_v33 }
  0xae   : > { %840 = vpow2.f32 %v760_v34  ;;  %v390_v36 = vpop.f32.mrf.mxu2 }
  0xaf   : > { %v1131_v37 = vadd.f32 %v390_v36, %v340_v35  ;;  %v419_v38 = vpop.f32.mrf.mxu3 }
  0xb0   : > { %v1133_v39 = vadd.f32 %v419_v38, %v340_v35  ;;  %v384_v40 = vpop.f32.mrf.mxu0 }
  0xb1   : > { %v765_v41 = vmul.f32 -1.442695, %v1131_v37  ;;  %v1136_v42 = vadd.f32 %v384_v40, %v330_v27  ;;  %v413_v43 = vpop.f32.mrf.mxu1 }
  0xb2   : > { %v766_v44 = vmul.f32 -1.442695, %v1133_v39  ;;  %v1139_v45 = vadd.f32 %v413_v43, %v330_v27 }
  0xb3   : > { %v839_v46 = vpop.eup %838  ;;  %842 = vpow2.f32 %v765_v41  ;;  %v761_v47 = vmul.f32 -1.442695, %v1136_v42 }
  0xb4   : > { %v841_v48 = vpop.eup %840  ;;  %844 = vpow2.f32 %v766_v44  ;;  %v762_v49 = vmul.f32 -1.442695, %v1139_v45  ;;  %v1143_v50 = vadd.f32 1.0, %v839_v46 }
  0xb5   : > { %846 = vpow2.f32 %v761_v47  ;;  %v1145_v51 = vadd.f32 1.0, %v841_v48 }
  0xb6   : > { %848 = vpow2.f32 %v762_v49  ;;  %v465_v5 = vand.u32 2147483648, %v1143_v50  ;;  %v463_v12 = vand.u32 2147483647, %v1143_v50  ;;  %vm459_vm7 = vweird.f32 %v1143_v50 }
  0xb7   : > { %850 = vrcp.f32 %v1143_v50  ;;  %v478_v13 = vand.u32 2147483647, %v1145_v51  ;;  %v480_v14 = vand.u32 2147483648, %v1145_v51  ;;  %vm474_vm12 = vweird.f32 %v1145_v51 }
  0xb8   : > { %v387_v53 = vpop.f32.mrf.mxu0  ;;  %852 = vrcp.f32 %v1145_v51  ;;  %v1174_v18 = vor.u32 1.1754944e-38, %v465_v5 }
  0xb9   : > { %v843_v54 = vpop.eup %842  ;;  %v1147_v55 = vadd.f32 %v387_v53, %v335_v52  ;;  %v416_v56 = vpop.f32.mrf.mxu1 }
  0xba   : > { %v845_v57 = vpop.eup %844  ;;  %v452_v58 = vadd.f32 1.0, %v843_v54  ;;  %v1150_v59 = vadd.f32 %v416_v56, %v335_v52 }
  0xbb   : > { %v847_v60 = vpop.eup %846  ;;  %v453_v61 = vadd.f32 1.0, %v845_v57  ;;  %v763_v62 = vmul.f32 -1.442695, %v1147_v55 }
  0xbc   : > { %854 = vrcp.f32 %v452_v58  ;;  %v1154_v63 = vadd.f32 1.0, %v847_v60  ;;  %v764_v0 = vmul.f32 -1.442695, %v1150_v59  ;;  %v849_v2 = vpop.eup %848  ;;  %v553_v9 = vand.u32 2147483647, %v452_v58 }
  0xbd   : > { %856 = vrcp.f32 %v453_v61  ;;  %v1158_v3 = vadd.f32 1.0, %v849_v2  ;;  %v1160_v4 = vpop.eup %850  ;;  %vm549_vm2 = vweird.f32 %v452_v58  ;;  %v555_v16 = vand.u32 2147483648, %v452_v58 }
  0xbe   : > { %858 = vrcp.f32 %v1154_v63  ;;  %v1163_v6 = vpop.eup %852  ;;  %vm564_vm3 = vweird.f32 %v453_v61  ;;  %v568_v21 = vand.u32 2147483647, %v453_v61  ;;  %vm1180_vm4 = vcmp.eq.f32.partialorder %v553_v9, 8.507059e+37 }
  0xbf   : > { %860 = vpow2.f32 %v763_v62  ;;  %v570_v27 = vand.u32 2147483648, %v453_v61  ;;  %v455_v31 = vmul.f32 %v1160_v4, %v1143_v50  ;;  %v470_v35 = vmul.f32 %v1163_v6, %v1145_v51 }
  0xc0   : > { %862 = vpow2.f32 %v764_v0  ;;  %v556_v38 = vor.u32 1.1754944e-38, %v555_v16  ;;  %vm569_vm9 = vcmp.eq.f32.partialorder %v568_v21, 8.507059e+37  ;;  %vm489_vm10 = vweird.f32 %v1154_v63 }
  0xc1   : > { %864 = vrcp.f32 %v1158_v3  ;;  %v571_v43 = vor.u32 1.1754944e-38, %v570_v27  ;;  %v493_v44 = vand.u32 2147483647, %v1154_v63  ;;  %v495_v47 = vand.u32 2147483648, %v1154_v63 }
  0xc2   : > { %v855_v8 = vpop.eup %854  ;;  %v456_v49 = vsub.f32 1.0, %v455_v31  ;;  %v508_v54 = vand.u32 2147483647, %v1158_v3  ;;  %v471_v56 = vsub.f32 1.0, %v470_v35  ;;  %vm504_vm13 = vweird.f32 %v1158_v3 }
  0xc3   : > { %v857_v10 = vpop.eup %856  ;;  %v545_v11 = vmul.f32 %v855_v8, %v452_v58  ;;  %vm550_vm5 = vweird.f32 %v855_v8  ;;  %v510_v2 = vand.u32 2147483648, %v1158_v3  ;;  %vm460_vm14 = vweird.f32 %v1160_v4 }
  0xc4   : > { %v1172_v15 = vpop.eup %858  ;;  %v560_v17 = vmul.f32 %v857_v10, %v453_v61  ;;  %vm565_vm6 = vweird.f32 %v857_v10  ;;  %vm551_vm8 = vmor %vm549_vm2, %vm550_vm5  ;;  %vm1213_vm15 = vcmp.eq.f32.partialorder %v493_v44, 8.507059e+37  ;;  %vm1221_vm2 = vcmp.eq.f32.partialorder %v508_v54, 8.507059e+37 }
  0xc5   : > { %v861_v19 = vpop.eup %860  ;;  %v546_v20 = vsub.f32 1.0, %v545_v11  ;;  %v485_v22 = vmul.f32 %v1172_v15, %v1154_v63  ;;  %vm566_vm11 = vmor %vm564_vm3, %vm565_vm6  ;;  %vm490_vm1 = vweird.f32 %v1172_v15  ;;  %v472_v16 = vmul.f32 %v1163_v6, %v471_v56 }
  0xc6   : > { %v863_v23 = vpop.eup %862  ;;  %v1178_v24 = vadd.f32 1.0, %v861_v19  ;;  %v561_v26 = vsub.f32 1.0, %v560_v17  ;;  %vm475_vm3 = vweird.f32 %v1163_v6  ;;  %vm1243_vm6 = vmor %vm459_vm7, %vm460_vm14  ;;  %v511_v50 = vor.u32 1.1754944e-38, %v510_v2 }
  0xc7   : > { %v1184_v28 = vadd.f32 1.0, %v863_v23  ;;  %v547_v29 = vmul.f32 %v855_v8, %v546_v20  ;;  %v1188_v33 = vpop.eup %864  ;;  %v486_v40 = vsub.f32 1.0, %v485_v22  ;;  %vm1262_vm7 = vmor %vm474_vm12, %vm475_vm3  ;;  %v481_v54 = vor.u32 1.1754944e-38, %v480_v14  ;;  %v582_v14 = vld [vmem:[%s1355_s5] sm:$0xf] }
  0xc8   : > { %866 = vrcp.f32 %v1178_v24  ;;  %v562_v34 = vmul.f32 %v857_v10, %v561_v26  ;;  %v500_v48 = vmul.f32 %v1188_v33, %v1158_v3  ;;  %v523_v19 = vand.u32 2147483647, %v1178_v24 }
  0xc9   : > { %868 = vrcp.f32 %v1184_v28  ;;  %v548_v36 = vadd.f32 %v855_v8, %v547_v29  ;;  %v487_v60 = vmul.f32 %v1172_v15, %v486_v40  ;;  %v525_v20 = vand.u32 2147483648, %v1178_v24 }
  0xca   : > { %v563_v41 = vadd.f32 %v857_v10, %v562_v34  ;;  %v501_v61 = vsub.f32 1.0, %v500_v48  ;;  %v538_v25 = vand.u32 2147483647, %v1184_v28  ;;  %vm505_vm5 = vweird.f32 %v1188_v33 }
  0xcb   : > { %v552_v46 = vsel %vm551_vm8, %v855_v8, %v548_v36  ;;  %v488_v21 = vadd.f32 %v1172_v15, %v487_v60  ;;  %v473_v36 = vadd.f32 %v1163_v6, %v472_v16  ;;  %vm534_vm14 = vweird.f32 %v1184_v28 }
  0xcc   : > { %v557_v52 = vsel %vm1180_vm4, %v556_v38, %v552_v46  ;;  %v567_v53 = vsel %vm566_vm11, %v857_v10, %v563_v41  ;;  %v502_v9 = vmul.f32 %v1188_v33, %v501_v61  ;;  %v457_v10 = vmul.f32 %v1160_v4, %v456_v49 }
  0xcd   : > { %v580_v57 = vmul.f32 %v557_v52, %v1131_v37  ;;  %v572_v58 = vsel %vm569_vm9, %v571_v43, %v567_v53  ;;  %v496_v37 = vor.u32 1.1754944e-38, %v495_v47  ;;  %vm1232_vm4 = vcmp.eq.f32.partialorder %v463_v12, 8.507059e+37  ;;  %vm1252_vm9 = vmor %vm489_vm10, %vm490_vm1 }
  0xce   : > { %v867_v62 = vpop.eup %866  ;;  %v581_v0 = vmul.f32 %v572_v58, %v1133_v39  ;;  %v503_v26 = vadd.f32 %v1188_v33, %v502_v9  ;;  %v540_v12 = vand.u32 2147483648, %v1184_v28  ;;  %v458_v34 = vadd.f32 %v1160_v4, %v457_v10  ;;  %vm1275_vm1 = vmor %vm504_vm13, %vm505_vm5 }
  0xcf   : > { %v869_v5 = vpop.eup %868  ;;  %605 = vmatpush.msrb.mxu2 %v580_v57  ;;  %v515_v7 = vmul.f32 %v867_v62, %v1178_v24  ;;  %vm520_vm8 = vweird.f32 %v867_v62  ;;  %vm519_vm10 = vweird.f32 %v1178_v24  ;;  %v492_v40 = vsel %vm1252_vm9, %v1172_v15, %v488_v21 }
  0xd0   : > { %625 = vmatpush.msrb.mxu3 %v581_v0  ;;  %v530_v39 = vmul.f32 %v869_v5, %v1184_v28  ;;  %vm535_vm11 = vweird.f32 %v869_v5  ;;  %vm521_vm12 = vmor %vm519_vm10, %vm520_vm8  ;;  %vm524_vm3 = vcmp.eq.f32.partialorder %v523_v19, 8.507059e+37  ;;  %v526_v43 = vor.u32 1.1754944e-38, %v525_v20 }
  0xd1   : > { %v516_v17 = vsub.f32 1.0, %v515_v7  ;;  %v507_v24 = vsel %vm1275_vm1, %v1188_v33, %v503_v26  ;;  %vm536_vm0 = vmor %vm534_vm14, %vm535_vm11  ;;  %vm539_vm9 = vcmp.eq.f32.partialorder %v538_v25, 8.507059e+37  ;;  %v541_v15 = vor.u32 1.1754944e-38, %v540_v12 }
  0xd2   : > { %v531_v23 = vsub.f32 1.0, %v530_v39  ;;  %v462_v3 = vsel %vm1243_vm6, %v1160_v4, %v458_v34  ;;  %v497_v48 = vsel %vm1213_vm15, %v496_v37, %v492_v40  ;;  %v477_v49 = vsel %vm1262_vm7, %v1163_v6, %v473_v36 }
  0xd3   : > { %v517_v29 = vmul.f32 %v867_v62, %v516_v17  ;;  %v512_v53 = vsel %vm1221_vm2, %v511_v50, %v507_v24  ;;  %v467_v56 = vsel %vm1232_vm4, %v1174_v18, %v462_v3  ;;  %vm589_vm13 = vcmask 261120  }
  0xd4   : > { %v532_v35 = vmul.f32 %v869_v5, %v531_v23  ;;  %v577_v57 = vmul.f32 %v512_v53, %v1139_v45  ;;  %v633_v60 = vstv %s291_s19  ;;  %vm1377_vm15 = vcmask 1043456   ;;  %s902_s19 = scalar_lea.hbm %s1357_s7, 16 }
  0xd5   : > { %v518_v63 = vadd.f32 %v867_v62, %v517_v29  ;;  %v634_v61 = vmul.f32 %v633_v60, %v1074_v1  ;;  %p904_p2 = scmp.lt.s32.totalorder %s902_s19, %s898_s11 }
  0xd6   : > { %v533_v44 = vadd.f32 %v869_v5, %v532_v35 }
  0xd7   : > { %v522_v28 = vsel %vm521_vm12, %v867_v62, %v518_v63  ;;  %p905_p3 = por %p904_p2, %p903_p1 }
  0xd8   : > { %v527_v46 = vsel %vm524_vm3, %v526_v43, %v522_v28  ;;  %v537_v47 = vsel %vm536_vm0, %v869_v5, %v533_v44  ;;  %vm479_vm0 = vcmp.eq.f32.partialorder %v478_v13, 8.507059e+37  ;;  %v635_v13 = vstv %s293_s15 }
  0xd9   : > { %v578_v33 = vmul.f32 %v527_v46, %v1147_v55  ;;  %v542_v52 = vsel %vm539_vm9, %v541_v15, %v537_v47  ;;  %v576_v55 = vmul.f32 %v497_v48, %v1136_v42  ;;  %v482_v6 = vsel %vm479_vm0, %v481_v54, %v477_v49  ;;  %v587_v42 = vpop.permute.xlu2 %586  ;;  %p906_p5 = pnand %p905_p3, %p901_p0 }
  0xda   : > { %v579_v4 = vmul.f32 %v542_v52, %v1150_v59  ;;  %v574_v59 = vmul.f32 %v467_v56, %v1125_v30  ;;  %v575_v51 = vmul.f32 %v482_v6, %v1127_v32 }
  0xdb   : > { %606 = vmatpush.msrb.mxu2 %v578_v33 }
  0xdc   : > { %626 = vmatpush.msrb.mxu3 %v579_v4 }
  0xdd   : > { %607 = vmatpush.msrb.mxu2 %v576_v55 }
  0xde   : > { %627 = vmatpush.msrb.mxu3 %v577_v57 }
  0xdf   : > { %608 = vmatpush.msrb.mxu2 %v574_v59 }
  0xe0   : > { %628 = vmatpush.msrb.mxu3 %v575_v51  ;;  %767 = vmatmul.msk.f32.vlgmr.msrb.gmra.mxu2 %vm589_vm13, %v582_v14 }
  0xe1   : > { %768 = vmatmul.msk.f32.vlgmr.msrb.gmra.mxu3 %vm589_vm13, %v582_v14 }
 0x163   : > { %v610_v45 = vpop.f32.mrf.mxu2 }
 0x164   : > { %v630_v30 = vpop.f32.mrf.mxu3  ;;  %v611_v58 = vadd.f32 %v610_v45, %v587_v42 }
 0x165   : > { %v631_v18 = vadd.f32 %v630_v30, %v587_v42 }
 0x166   : > { %v636_v0 = vmul.f32 %v635_v13, %v611_v58 }
 0x167   : > { %v637_v32 = vmul.f32 %v635_v13, %v631_v18 }
 0x169   : > { %v640_v62 = vrot.slane %v637_v32, 4 }
 0x16b   : > { %v641_v2 = vsel %vm1377_vm15, %v636_v0, %v640_v62 }
 0x16c   : > { %v643_v5 = vadd.f32 %v641_v2, %v634_v61 }
 0x16e   : > { %644 = vst [vmem:[%s278_s18] sm:$0xff] %v643_v5 }
 0x16f   : > { %909 = shalt.err (!%p906_p5)
}
 0x170   : > { %778 = dma.vmem_to_hbm [thread:$0]  (%p1049_p4), %s662_s27, 128, %s664_s24, %s646_s8  }
 0x171 PF: > { %p784_p6 = scmp.ge.s32.totalorder %s962_s10, 2  ;;  %s675_s21 = sand.u32 1, %s942_s28  }
 0x172   : > { %s676_s25 = scalar_lea.sflag [#allocation5], %s675_s21 }
 0x173   : > { %p781_p7 = pnand %p784_p6, %p1056_p8 }
 0x175   : > { %p782_p9 = pneg %p781_p7 }
 0x177   : > { %937 = dma.done.wait (%p782_p9), %s676_s25, 128  }
 0x178   : > { %939 = vsyncadd (%p782_p9), %s676_s25, 4294967168  ;;  %s28_s10 = sadd.s32 1, %s962_s10   ;;  %s1378_s28 = smov %s946_s29 }
 0x179   : > { %p25_p10 = scmp.ge.s32.totalorder %s28_s10, 4   ;;  %s1379_s29 = smov %s950_s30 }
 0x17a   : > { %s1380_s30 = smov %s1062_s17  ;;  %s1381_s8 = smov %s958_s9 }
 0x17b   : > { %s1382_s9 = smov %s1384_s12  ;;  %27 = sbr.rel (!%p25_p10) target bundleno = 10 (0xa), region = 79 }
 0x180   :  { %682 = vsyncpa [#allocation5], 1 }
 0x181   :  { %684 = vsyncpa [#allocation5 + $0x1], 1 }

</bundles_post_ra>
